<compile_context>
chip_gen: v7x
topology: tpu7x:2x2x1
jax: 0.10.0
libtpu: 0.0.40
codegen_flags: <defaults>
</compile_context>

<pallas_src>
import functools

import jax
import jax.numpy as jnp
from jax import lax
from jax.experimental import pallas as pl
from jax.experimental.pallas import tpu as pltpu

_KSIZES = (3, 5, 7, 9, 11)
_NUM_BRANCHES = 1 + len(_KSIZES)   # identity + 5 pools


def _neg_fill(dtype):
    if jnp.issubdtype(dtype, jnp.floating):
        return jnp.array(-jnp.inf, dtype=dtype)
    return jnp.array(jnp.iinfo(dtype).min, dtype=dtype)  # int-safe "minus inf"


def _spp_kernel(x_ref, o_ref, cur_ref, col_ref, *, w, hw):
    # x_ref:   (1, TC, HW)          input block (resident across the branch axis)
    # o_ref:   (1, 1, TC, HW)       one branch of the fused output
    # cur_ref: (TC, HW_PAD)         running pool, carried across the branch axis
    # col_ref: (TC, HW_PAD) int32   column index of each flattened pixel
    b = pl.program_id(2)
    tc, hw_pad = cur_ref.shape
    dtype = cur_ref.dtype
    neg = _neg_fill(dtype)

    @pl.when(b == 0)
    def _init():
        flat = lax.broadcasted_iota(jnp.int32, (tc, hw_pad), 1)
        col_ref[...] = flat % w
        x = x_ref[0]
        if hw_pad == hw:
            cur_ref[...] = x
        else:
            cur_ref[...] = jnp.full((tc, hw_pad), neg, dtype)
            cur_ref[:, :hw] = x                 # masked store of the valid lanes
        o_ref[0, 0] = x                         # identity branch of the concat

    @pl.when(b > 0)
    def _dilate():
        flat = lax.broadcasted_iota(jnp.int32, (tc, hw_pad), 1)
        col = col_ref[...]
        ok_next_row = flat < (hw - w)           # has a row below  (h < H-1)
        ok_prev_row = flat >= w                 # has a row above  (h > 0)
        ok_next_col = col < (w - 1)             # has a col right  (w < W-1)
        ok_prev_col = col > 0                   # has a col left   (w > 0)

        cur = cur_ref[...]
        # grow window by 1 on each side along H (stride-w shift in flat layout)
        dn = jnp.where(ok_next_row, pltpu.roll(cur, hw_pad - w, axis=1), neg)
        up = jnp.where(ok_prev_row, pltpu.roll(cur, w, axis=1), neg)
        cur = jnp.maximum(cur, jnp.maximum(dn, up))
        # grow window by 1 on each side along W
        rt = jnp.where(ok_next_col, pltpu.roll(cur, hw_pad - 1, axis=1), neg)
        lf = jnp.where(ok_prev_col, pltpu.roll(cur, 1, axis=1), neg)
        cur = jnp.maximum(cur, jnp.maximum(rt, lf))

        cur_ref[...] = cur
        o_ref[0, 0] = cur if hw_pad == hw else cur[:, :hw]


def _vmem_limit_bytes():
    """Per-generation scoped-VMEM request (v5e/v6e: 128 MiB physical, v7x: 64)."""
    cap = None
    try:
        cap = int(getattr(pltpu.get_tpu_info(), "vmem_capacity_bytes", 0)) or None
    except Exception:
        cap = None
    if cap is None:
        cap = 64 * 1024 * 1024                  # conservative default (v7x)
    # leave ~1/4 of physical VMEM for compiler-internal scratch, cap at 96 MiB
    return max(32 * 1024 * 1024, min(3 * cap // 4, 96 * 1024 * 1024))


def _sublane_multiple(itemsize):
    # sub-32-bit dtypes pack along sublanes: f32 -> 8, bf16 -> 16, int8/fp8 -> 32
    return 8 * max(1, 4 // itemsize)


def _pick_block_c(c, hw, hw_pad, itemsize, budget_bytes):
    """Largest channel block whose pipelined VMEM footprint fits the budget."""
    per_chan = (
        2 * hw * itemsize          # input block, double-buffered
        + 2 * hw * itemsize        # one-branch output block, double-buffered
        + hw_pad * itemsize        # running-pool carry scratch
        + hw_pad * 4               # column-index scratch (int32)
        + 6 * hw_pad * 4           # live temporaries (rolls / selects)
    )
    max_tc = max(1, budget_bytes // per_chan)
    if c <= max_tc:
        return c                   # whole channel dim in one block
    mult = _sublane_multiple(itemsize)
    tc = (max_tc // mult) * mult
    if tc == 0:
        tc = min(mult, c)          # enormous H*W: smallest legal tile
    return tc


def spp(x):
    """y = concat([x] + [maxpool_k(x) for k in (3,5,7,9,11)], axis=1), NCHW."""
    n, c, h, w = x.shape
    hw = h * w
    hw_pad = ((hw + 127) // 128) * 128          # lane-pad so all shifts are rolls
    itemsize = x.dtype.itemsize
    xf = x.reshape(n, c, hw)                    # contiguous merge, no copy

    vmem_limit = _vmem_limit_bytes()
    tc = _pick_block_c(c, hw, hw_pad, itemsize, vmem_limit // 2)
    c_blocks = pl.cdiv(c, tc)
    # v7x has 2 TensorCores per chip: expose >= 2 programs on the parallel axes.
    mult = _sublane_multiple(itemsize)
    if n * c_blocks < 2 and c >= 2 * mult:
        tc = (-(-((c + 1) // 2) // mult)) * mult
        c_blocks = pl.cdiv(c, tc)
    # NOTE: for very wide maps (W >= 128) a (TC, H, W) block layout would turn the
    # H-shifts into sublane rolls; kept flat here for uniform correctness.

    kernel = functools.partial(_spp_kernel, w=w, hw=hw)
    cost = pl.CostEstimate(
        flops=12 * len(_KSIZES) * n * c * hw,
        transcendentals=0,
        bytes_accessed=(1 + _NUM_BRANCHES) * n * c * hw * itemsize,
    )

    out = pl.pallas_call(
        kernel,
        grid=(n, c_blocks, _NUM_BRANCHES),
        in_specs=[pl.BlockSpec((1, tc, hw), lambda i, j, b: (i, j, 0))],
        out_specs=pl.BlockSpec((1, 1, tc, hw), lambda i, j, b: (i, b, j, 0)),
        out_shape=jax.ShapeDtypeStruct((n, _NUM_BRANCHES, c, hw), x.dtype),
        scratch_shapes=[
            pltpu.VMEM((tc, hw_pad), x.dtype),    # running pool carry
            pltpu.VMEM((tc, hw_pad), jnp.int32),  # column indices
        ],
        compiler_params=pltpu.CompilerParams(
            dimension_semantics=("parallel", "parallel", "arbitrary"),
            vmem_limit_bytes=vmem_limit,
        ),
        cost_estimate=cost,
    )(xf)
    # (N, 6, C, HW) -> (N, 6C, H, W): contiguous-dim reshape (no data movement);
    # branch-major order matches torch.cat([x, p3, p5, p7, p9, p11], dim=1).
    return out.reshape(n, _NUM_BRANCHES * c, h, w)


def _spp_reference(x):
    """Pure-JAX reference (lax.reduce_window) matching nn.MaxPool2d(k,1,k//2)."""
    y = [x]
    for k in _KSIZES:
        p = k // 2
        y.append(
            lax.reduce_window(
                x, -jnp.inf, lax.max,
                window_dimensions=(1, 1, k, k),
                window_strides=(1, 1, 1, 1),
                padding=((0, 0), (0, 0), (p, p), (p, p)),
            )
        )
    return jnp.concatenate(y, axis=1)


if __name__ == "__main__":
    key = jax.random.PRNGKey(0)
    k1, k2 = jax.random.split(key)

    # Primary shape: lane-aligned H*W (16*16 = 256).
    x = jax.random.normal(k1, (2, 4, 16, 16), dtype=jnp.float32)
    out = spp(x)
    jax.block_until_ready(out)
    assert out.shape == (2, 4 * _NUM_BRANCHES, 16, 16), out.shape
    assert jnp.allclose(out, _spp_reference(x)), "SPP mismatch (aligned H*W)"

    # Non-128-multiple H*W (10*12 = 120) exercises the lane-padded carry path.
    x2 = jax.random.normal(k2, (1, 8, 10, 12), dtype=jnp.float32)
    out2 = spp(x2)
    jax.block_until_ready(out2)
    assert out2.shape == (1, 8 * _NUM_BRANCHES, 10, 12), out2.shape
    assert jnp.allclose(out2, _spp_reference(x2)), "SPP mismatch (padded H*W)"

    print("KERNEL_OK")
</pallas_src>

<mosaic_0001>
module attributes {stable_mosaic.version = 11 : i64} {
  func.func @_spp_kernel(%arg0: i32, %arg1: i32, %arg2: i32, %arg3: memref<1x4x256xf32, #tpu.memory_space<vmem>>, %arg4: memref<1x1x4x256xf32, #tpu.memory_space<vmem>>, %arg5: memref<4x256xf32, #tpu.memory_space<vmem>>, %arg6: memref<4x256xi32, #tpu.memory_space<vmem>>) attributes {dimension_semantics = [#tpu.dimension_semantics<parallel>, #tpu.dimension_semantics<parallel>, #tpu.dimension_semantics<arbitrary>], iteration_bounds = array<i64: 2, 1, 6>, scalar_prefetch = 0 : i64, scratch_operands = 2 : i64, tpu.core_type = #tpu.core_type<tc>, window_params = [{transform_indices = @transform_0, window_bounds = array<i64: 1, 4, 256>}, {transform_indices = @transform_1, window_bounds = array<i64: 1, 1, 4, 256>}]} {
    %c0_i32 = arith.constant 0 : i32
    %0 = arith.cmpi eq, %arg2, %c0_i32 : i32
    %1 = arith.extui %0 : i1 to i32
    %c0_i32_0 = arith.constant 0 : i32
    %2 = arith.cmpi ne, %1, %c0_i32_0 : i32
    scf.if %2 {
      %6 = tpu.iota {dimensions = array<i32: 1>} : vector<4x256xi32>
      %c16_i32 = arith.constant 16 : i32
      %c0_i32_3 = arith.constant 0 : i32
      %7 = arith.cmpi eq, %c16_i32, %c0_i32_3 : i32
      %c1_i32 = arith.constant 1 : i32
      %8 = arith.select %7, %c1_i32, %c16_i32 : i32
      %9 = vector.broadcast %8 : i32 to vector<4x256xi32>
      %10 = arith.remsi %6, %9 : vector<4x256xi32>
      %c0_i32_4 = arith.constant 0 : i32
      %11 = vector.broadcast %c0_i32_4 : i32 to vector<4x256xi32>
      %12 = arith.cmpi ne, %10, %11 : vector<4x256xi32>
      %c0_i32_5 = arith.constant 0 : i32
      %13 = vector.broadcast %c0_i32_5 : i32 to vector<4x256xi32>
      %14 = arith.cmpi slt, %10, %13 : vector<4x256xi32>
      %c0_i32_6 = arith.constant 0 : i32
      %15 = arith.cmpi slt, %8, %c0_i32_6 : i32
      %16 = vector.broadcast %15 : i1 to vector<4x256xi1>
      %17 = vector.broadcast %16 : vector<4x256xi1> to vector<4x256xi1>
      %18 = arith.xori %14, %17 : vector<4x256xi1>
      %19 = arith.andi %18, %12 : vector<4x256xi1>
      %20 = vector.broadcast %8 : i32 to vector<4x256xi32>
      %21 = arith.addi %10, %20 : vector<4x256xi32>
      %22 = arith.select %19, %21, %10 : vector<4x256xi1>, vector<4x256xi32>
      %c0 = arith.constant 0 : index
      %c0_7 = arith.constant 0 : index
      %23 = vector.load %arg6[%c0, %c0_7] : memref<4x256xi32, #tpu.memory_space<vmem>>, vector<4x256xi32>
      tpu.vector_store %arg6[%c0, %c0_7], %22 {strides = array<i32>} : memref<4x256xi32, #tpu.memory_space<vmem>>, vector<4x256xi32>,
      %c0_8 = arith.constant 0 : index
      %c0_9 = arith.constant 0 : index
      %c0_10 = arith.constant 0 : index
      %24 = vector.load %arg3[%c0_8, %c0_9, %c0_10] : memref<1x4x256xf32, #tpu.memory_space<vmem>>, vector<1x4x256xf32>
      %25 = vector.shape_cast %24 : vector<1x4x256xf32> to vector<4x256xf32>
      %c0_11 = arith.constant 0 : index
      %c0_12 = arith.constant 0 : index
      %26 = vector.load %arg5[%c0_11, %c0_12] : memref<4x256xf32, #tpu.memory_space<vmem>>, vector<4x256xf32>
      tpu.vector_store %arg5[%c0_11, %c0_12], %25 {strides = array<i32>} : memref<4x256xf32, #tpu.memory_space<vmem>>, vector<4x256xf32>,
      %c0_13 = arith.constant 0 : index
      %c0_14 = arith.constant 0 : index
      %c0_15 = arith.constant 0 : index
      %c0_16 = arith.constant 0 : index
      %27 = vector.load %arg4[%c0_13, %c0_14, %c0_15, %c0_16] : memref<1x1x4x256xf32, #tpu.memory_space<vmem>>, vector<1x1x4x256xf32>
      %28 = vector.shape_cast %27 : vector<1x1x4x256xf32> to vector<4x256xf32>
      %29 = vector.shape_cast %25 : vector<4x256xf32> to vector<1x1x4x256xf32>
      tpu.vector_store %arg4[%c0_13, %c0_14, %c0_15, %c0_16], %29 {strides = array<i32>} : memref<1x1x4x256xf32, #tpu.memory_space<vmem>>, vector<1x1x4x256xf32>,
    } else {
    }
    %c0_i32_1 = arith.constant 0 : i32
    %3 = arith.cmpi sgt, %arg2, %c0_i32_1 : i32
    %4 = arith.extui %3 : i1 to i32
    %cst = arith.constant 0xFF800000 : f32
    %c0_i32_2 = arith.constant 0 : i32
    %5 = arith.cmpi ne, %4, %c0_i32_2 : i32
    scf.if %5 {
      %6 = tpu.iota {dimensions = array<i32: 1>} : vector<4x256xi32>
      %c0 = arith.constant 0 : index
      %c0_3 = arith.constant 0 : index
      %7 = vector.load %arg6[%c0, %c0_3] : memref<4x256xi32, #tpu.memory_space<vmem>>, vector<4x256xi32>
      %c240_i32 = arith.constant 240 : i32
      %8 = vector.broadcast %c240_i32 : i32 to vector<4x256xi32>
      %9 = arith.cmpi slt, %6, %8 : vector<4x256xi32>
      %c16_i32 = arith.constant 16 : i32
      %10 = vector.broadcast %c16_i32 : i32 to vector<4x256xi32>
      %11 = arith.cmpi sge, %6, %10 : vector<4x256xi32>
      %c15_i32 = arith.constant 15 : i32
      %12 = vector.broadcast %c15_i32 : i32 to vector<4x256xi32>
      %13 = arith.cmpi slt, %7, %12 : vector<4x256xi32>
      %c0_i32_4 = arith.constant 0 : i32
      %14 = vector.broadcast %c0_i32_4 : i32 to vector<4x256xi32>
      %15 = arith.cmpi sgt, %7, %14 : vector<4x256xi32>
      %c0_5 = arith.constant 0 : index
      %c0_6 = arith.constant 0 : index
      %16 = vector.load %arg5[%c0_5, %c0_6] : memref<4x256xf32, #tpu.memory_space<vmem>>, vector<4x256xf32>
      %c240_i32_7 = arith.constant 240 : i32
      %17 = tpu.dynamic_rotate %16 by %c240_i32_7 dim 1 : vector<4x256xf32>, i32 -> vector<4x256xf32>
      %18 = vector.broadcast %cst : f32 to vector<4x256xf32>
      %19 = arith.select %9, %17, %18 : vector<4x256xi1>, vector<4x256xf32>
      %c16_i32_8 = arith.constant 16 : i32
      %20 = tpu.dynamic_rotate %16 by %c16_i32_8 dim 1 : vector<4x256xf32>, i32 -> vector<4x256xf32>
      %21 = vector.broadcast %cst : f32 to vector<4x256xf32>
      %22 = arith.select %11, %20, %21 : vector<4x256xi1>, vector<4x256xf32>
      %23 = arith.maximumf %19, %22 : vector<4x256xf32>
      %24 = arith.maximumf %16, %23 : vector<4x256xf32>
      %c255_i32 = arith.constant 255 : i32
      %25 = tpu.dynamic_rotate %24 by %c255_i32 dim 1 : vector<4x256xf32>, i32 -> vector<4x256xf32>
      %26 = vector.broadcast %cst : f32 to vector<4x256xf32>
      %27 = arith.select %13, %25, %26 : vector<4x256xi1>, vector<4x256xf32>
      %c1_i32 = arith.constant 1 : i32
      %28 = tpu.dynamic_rotate %24 by %c1_i32 dim 1 : vector<4x256xf32>, i32 -> vector<4x256xf32>
      %29 = vector.broadcast %cst : f32 to vector<4x256xf32>
      %30 = arith.select %15, %28, %29 : vector<4x256xi1>, vector<4x256xf32>
      %31 = arith.maximumf %27, %30 : vector<4x256xf32>
      %32 = arith.maximumf %24, %31 : vector<4x256xf32>
      %c0_9 = arith.constant 0 : index
      %c0_10 = arith.constant 0 : index
      %33 = vector.load %arg5[%c0_9, %c0_10] : memref<4x256xf32, #tpu.memory_space<vmem>>, vector<4x256xf32>
      tpu.vector_store %arg5[%c0_9, %c0_10], %32 {strides = array<i32>} : memref<4x256xf32, #tpu.memory_space<vmem>>, vector<4x256xf32>,
      %c0_11 = arith.constant 0 : index
      %c0_12 = arith.constant 0 : index
      %c0_13 = arith.constant 0 : index
      %c0_14 = arith.constant 0 : index
      %34 = vector.load %arg4[%c0_11, %c0_12, %c0_13, %c0_14] : memref<1x1x4x256xf32, #tpu.memory_space<vmem>>, vector<1x1x4x256xf32>
      %35 = vector.shape_cast %34 : vector<1x1x4x256xf32> to vector<4x256xf32>
      %36 = vector.shape_cast %32 : vector<4x256xf32> to vector<1x1x4x256xf32>
      tpu.vector_store %arg4[%c0_11, %c0_12, %c0_13, %c0_14], %36 {strides = array<i32>} : memref<1x1x4x256xf32, #tpu.memory_space<vmem>>, vector<1x1x4x256xf32>,
    } else {
    }
    return
  }
  func.func @transform_0(%arg0: i32, %arg1: i32, %arg2: i32) -> (i32, i32, i32) {
    %c0_i32 = arith.constant 0 : i32
    %c0_i32_0 = arith.constant 0 : i32
    return %arg0, %arg1, %c0_i32 : i32, i32, i32
  }
  func.func @transform_1(%arg0: i32, %arg1: i32, %arg2: i32) -> (i32, i32, i32, i32) {
    %c0_i32 = arith.constant 0 : i32
    %c0_i32_0 = arith.constant 0 : i32
    return %arg0, %arg2, %arg1, %c0_i32 : i32, i32, i32, i32
  }
}

</mosaic_0001>

<bundles_post_ra>
// kernel: tpu_custom_call.1
= control target key start
LH: loop header
LB: loop body
LE: loop exit
PB: predicated region body
PF: predicated region fallthrough
CT: control target
= control target key end

     0   :  { %6 = vsyncpa [#allocation5], 0  ;;  %s899_s0 = inlined_call_operand.hbm [shape: f32[2,4,256], index: 0, kind: input, shape index: {}]   ;;  %s900_s1 = inlined_call_operand.hbm [shape: f32[2,6,4,256], index: 1, kind: output, shape index: {}]  }
   0x1   :  { %8 = vsyncpa [#allocation5 + $0x1], 0 }
   0x2   :  { %9 = vsyncpa [#allocation6], 0 }
   0x3   :  { %11 = vsyncpa [#allocation6 + $0x1], 0  ;;  %s677_s6 = smov 0   ;;  %s679_s7 = smov 0  }
   0x4   :  { %s681_s8 = smov 0   ;;  %s683_s9 = smov 0  }
   0x5   :  { %s685_s10 = smov 0   ;;  %s687_s11 = smov 0  }
   0x6   :  { %s689_s12 = smov 0   ;;  %s691_s13 = smov 0  }
   0x7   :  { %s693_s14 = smov 0   ;;  %s695_s15 = smov 0  }
   0x8   :  { %s697_s16 = smov 0  }
   0x9 LB: > { %s381_s17 = sadd.s32 4294967295, %s659_s16   ;;  %s382_s18 = sadd.s32 4294967294, %s659_s16   ;;  %s659_s16 = sphi %s697_s16, %s17_s16   ;;  %s655_s15 = sphi %s695_s15, %s920_s15   ;;  %s651_s14 = sphi %s693_s14, %s919_s14   ;;  %s647_s13 = sphi %s691_s13, %s918_s13   ;;  %s643_s12 = sphi %s689_s12, %s917_s12   ;;  %s639_s11 = sphi %s687_s11, %s916_s11   ;;  %s635_s10 = sphi %s685_s10, %s915_s10   ;;  %s631_s9 = sphi %s683_s9, %s914_s9   ;;  %s627_s8 = sphi %s681_s8, %s913_s8   ;;  %s623_s7 = sphi %s679_s7, %s912_s7   ;;  %s619_s6 = sphi %s677_s6, %s911_s6  }
   0xa   : > { %s29_s19 = sadd.s32 1, %s651_s14  ;;  %s36_s20 = sadd.s32 1, %s655_s15 }
   0xb   : > { %p30_p0 = scmp.ge.s32.totalorder %s29_s19, 6  ;;  %s45_s21 = sadd.s32 1, %s639_s11 }
   0xc   : > { %p52_p1 = scmp.ne.s32.totalorder %s639_s11, %s635_s10  ;;  %p53_p2 = scmp.eq.s32.totalorder %s659_s16, 0 }
   0xd   : > { %s922_s19 = smov (%p30_p0, %s29_s19), 0  ;;  %s924_s20 = smov (!%p30_p0, %s36_s20), %s655_s15 }
   0xe   : > { %p741_p3 = por %p53_p2, %p52_p1  ;;  %p58_p4 = scmp.ne.s32.totalorder %s635_s10, %s631_s9 }
   0xf   : > { %p38_p5 = scmp.ge.s32.totalorder %s924_s20, 2  ;;  %p59_p6 = scmp.eq.s32.totalorder %s381_s17, 0 }
  0x10   : > { %s69_s23 = ssub.s32 %s651_s14, %s922_s19  ;;  %s75_s24 = sadd.s32 1, %s627_s8 }
  0x11   : > { %s926_s20 = smov (%p38_p5, %s924_s20), 0  ;;  %p751_p7 = por %p59_p6, %p58_p4 }
  0x12   : > { %p85_p8 = scmp.ne.s32.totalorder %s627_s8, %s623_s7  ;;  %s40_s26 = ssub.s32 %s655_s15, %s926_s20 }
  0x13   : > { %p86_p9 = scmp.eq.s32.totalorder %s381_s17, 11  ;;  %p43_p10 = scmp.eq.s32.totalorder %s40_s26, 0 }
  0x14   : > { %s70_s27 = sor.u32 %s69_s23, %s40_s26  ;;  %p91_p13 = scmp.ne.s32.totalorder %s623_s7, %s619_s6 }
  0x15   : > { %p73_p11 = scmp.eq.s32.totalorder %s70_s27, 0  ;;  %p759_p12 = por %p86_p9, %p85_p8 }
  0x16   : > { %s764_s29 = scalar_select %p43_p10, %s639_s11, %s45_s21  }
  0x17   : > { %s904_s28 = scalar_select %p759_p12, 1, 0 }
  0x18   : > { %s767_s30 = scalar_select %p73_p11, %s627_s8, %s75_s24  }
  0x19   : > { %p92_p0 = scmp.eq.s32.totalorder %s382_s18, 11  ;;  %p412_p1 = scmp.lt.s32.totalorder %s659_s16, 12 }
  0x1a   : > { %s112_s3 = sand.u32 1, %s639_s11   ;;  %s398_s5 = sshll.u32 %s655_s15, 7 }
  0x1b   : > { %p772_p2 = por %p92_p0, %p91_p13  ;;  %s385_s4 = sshll.u32 %s112_s3, 3 }
  0x1c   : > { %s781_s23 = scalar_lea.hbm %s899_s0, %s398_s5  ;;  %s116_s21 = scalar_lea.vmem [#allocation4], %s385_s4 }
  0x1d   : > { %s905_s2 = scalar_select %p772_p2, 1, 0 }
  0x1e   : > { %s126_s24 = sshll.u32 %s116_s21, 4  ;;  %p787_p4 = pnand %p412_p1, %p741_p3  ;;  %s783_s24 = int_to_ptr.vmem [resolvable:$true] %s126_s24 }
  0x1f   : > { %s113_s26 = scalar_lea.sflag [#allocation5], %s112_s3  ;;  %s507_s27 = scalar_lea.hbm %s781_s23, 128 }
  0x20   : > { %p508_p8 = scmp.ne.s32.totalorder %s781_s23, %s507_s27  ;;  %p509_p9 = pneg %p787_p4 }
  0x21   : > { %s512_s22 = scalar_lea.hbm %s899_s0, 256  ;;  %p513_p3 = scmp.lt.u32.totalorder %s781_s23, %s899_s0 }
  0x22   : > { %p510_p10 = pnand %p509_p9, %p508_p8  ;;  %p514_p13 = scmp.lt.u32.totalorder %s512_s22, %s507_s27 }
  0x23   : > { %p516_p1 = scmp.lt.u32.totalorder %s507_s27, %s781_s23 }
  0x24   : > { %p511_p11 = pneg %p510_p10  ;;  %p515_p0 = por %p514_p13, %p513_p3 }
  0x26   : > { %p517_p5 = por %p516_p1, %p515_p0 }
  0x28   : > { %p518_p6 = pnand %p517_p5, %p511_p11 }
  0x2a   : > { %521 = shalt.err (!%p518_p6)
}
  0x2b   : > { %s522_s3 = scalar_lea.vmem %s783_s24, 128  ;;  %s661_s21 = smov [#allocation4]  }
  0x2c   : > { %p523_p8 = scmp.ne.s32.totalorder %s783_s24, %s522_s3  ;;  %s527_s4 = sshll.u32 %s661_s21, 4  ;;  %s528_s4 = int_to_ptr.vmem [resolvable:$false] %s527_s4 }
  0x2d   : > { %s529_s5 = scalar_lea.vmem %s528_s4, 256  ;;  %p530_p12 = scmp.lt.s32.totalorder %s783_s24, %s528_s4 }
  0x2e   : > { %p525_p10 = pnand %p523_p8, %p509_p9  ;;  %p531_p3 = scmp.lt.s32.totalorder %s529_s5, %s522_s3 }
  0x30   : > { %p526_p2 = pneg %p525_p10  ;;  %p532_p13 = por %p531_p3, %p530_p12 }
  0x32   : > { %p533_p0 = pnand %p532_p13, %p526_p2 }
  0x34   : > { %536 = shalt.err (!%p533_p0)
}
  0x35   : > { %407 = dma.hbm_to_vmem [thread:$0]  (!%p787_p4), %s781_s23, 128, %s783_s24, %s113_s26  }
  0x36   : > { %p907_p5 = scmp.lt.s32.totalorder %s659_s16, 13  ;;  %p908_p6 = scmp.ge.s32.totalorder %s659_s16, 1 }
  0x38   : > { %p132_p9 = pnand %p908_p6, %p907_p5 }
  0x39   : > { %s137_s27 = sand.u32 (!%p132_p9), 1, %s635_s10  }
  0x3a   : > { %135 = sbr.rel (%p132_p9) target bundleno = 364 (0x16c), region = 24  ;;  %s389_s22 = sshll.u32 (!%p132_p9), %s137_s27, 3 }
  0x3b   : > { %s138_s9 = scalar_lea.sflag (!%p132_p9), [#allocation5], %s137_s27  ;;  %s141_s17 = scalar_lea.vmem (!%p132_p9), [#allocation4], %s389_s22 }
  0x41   : > { %610 = dma.done.wait (%p751_p7), %s138_s9, 128  }
  0x42   : > { %612 = vsyncadd (%p751_p7), %s138_s9, 4294967168  ;;  %s157_s18 = sand.u32 1, %s623_s7   ;;  %p391_p12 = scmp.ne.s32.totalorder %s643_s12, 0 }
  0x43   : > { %s390_s23 = sshll.u32 %s157_s18, 3  ;;  %v164_v0 = vlaneseq (!%p391_p12)  ;;  %v193_v1 = vld [vmem:[%s141_s17] sm:$0xff] (!%p391_p12) }
  0x44   : > { %s830_s24 = scalar_lea.vmem [#allocation7], %s390_s23  ;;  %163 = sbr.rel (%p391_p12) target bundleno = 78 (0x4e), region = 32  ;;  %194 = vst [vmem:[#allocation2] sm:$0xff] (!%p391_p12), %v193_v1 }
  0x45   : > { %195 = vst [vmem:[%s830_s24] sm:$0xff] (!%p391_p12), %v193_v1  ;;  %v165_v2 = vand.u32 (!%p391_p12), 127, %v164_v0 }
  0x47   : > { %v166_v3 = vadd.s32 (!%p391_p12), 128, %v165_v2  ;;  %v171_v4 = vand.u32 (!%p391_p12), 15, %v165_v2 }
  0x49   : > { %v178_v5 = vand.u32 (!%p391_p12), 15, %v166_v3 }
  0x4b   : > { %v191_v6 = vcombine.low %v171_v4, %v178_v5 }
  0x4d   : > { %192 = vst [vmem:[#allocation3] sm:$0xff] %v191_v6 }
  0x4e PF: > { %p392_p7 = scmp.le.s32.totalorder %s643_s12, 0 }
  0x4f   : > { %v210_v7 = vld [vmem:[#allocation2] sm:$0xff] (!%p392_p7)  ;;  %s662_s25 = smov (!%p392_p7), 16   ;;  %s663_s26 = smov (!%p392_p7), 112   ;;  %v200_v9 = vlaneseq (!%p392_p7) }
  0x50   : > { %199 = sbr.rel (%p392_p7) target bundleno = 337 (0x151), region = 36  ;;  %223 = vrot.lane.b32.xlu1 (!%p392_p7), %v210_v7, %s662_s25  ;;  %214 = vrot.lane.b32.xlu0 (!%p392_p7), %v210_v7, %s663_s26  ;;  %v212_v8 = vcombine.high (!%p392_p7), %v210_v7, %v210_v7  ;;  %s664_s3 = smov (!%p392_p7), 127  }
  0x51   : > { %v201_v10 = vand.u32 (!%p392_p7), 127, %v200_v9  ;;  %s665_s21 = smov (!%p392_p7), 1  }
  0x53   : > { %v202_v11 = vadd.s32 (!%p392_p7), 128, %v201_v10  ;;  %vm227_vm0 = vcmp.lt.s32.totalorder (!%p392_p7), %v201_v10, 16  ;;  %vm218_vm1 = vcmp.lt.s32.totalorder (!%p392_p7), %v201_v10, 112  ;;  %vm206_vm2 = vcmp.ge.s32.totalorder (!%p392_p7), %v201_v10, 16 }
  0x54   : > { %225 = vrot.lane.b32.xlu1 (!%p392_p7), %v212_v8, %s662_s25  ;;  %216 = vrot.lane.b32.xlu0 (!%p392_p7), %v212_v8, %s663_s26  ;;  %vm246_vm4 = vcmp.lt.s32.totalorder (!%p392_p7), %v201_v10, 127  ;;  %v203_v31 = vld [vmem:[#allocation3] sm:$0xff] (!%p392_p7)  ;;  %vm258_vm5 = vcmp.lt.s32.totalorder (!%p392_p7), %v201_v10, 1 }
  0x55   : > { %vm205_vm3 = vcmp.lt.s32.totalorder (!%p392_p7), %v202_v11, 240  ;;  %vm208_vm6 = vcmp.lt.s32.totalorder (!%p392_p7), %v203_v31, 15  ;;  %vm209_vm7 = vcmp.gt.s32.totalorder (!%p392_p7), %v203_v31, 0 }
  0xc2   : > { %v224_v12 = vpop.permute.xlu1 %223  ;;  %v215_v13 = vpop.permute.xlu0 %214 }
  0xc6   : > { %v226_v14 = vpop.permute.xlu1 %225  ;;  %v217_v15 = vpop.permute.xlu0 %216 }
  0xc7   : > { %v228_v16 = vsel %vm227_vm0, %v224_v12, %v226_v14  ;;  %v229_v17 = vsel %vm227_vm0, %v226_v14, %v224_v12  ;;  %v219_v18 = vsel %vm218_vm1, %v215_v13, %v217_v15  ;;  %v220_v19 = vsel %vm218_vm1, %v217_v15, %v215_v13 }
  0xc8   : > { %v230_v20 = vsel %vm206_vm2, %v229_v17, -inf  ;;  %v222_v21 = vsel %vm205_vm3, %v220_v19, -inf }
  0xc9   : > { %v232_v22 = vmax.f32 %v219_v18, %v230_v20  ;;  %v233_v23 = vmax.f32 %v222_v21, %v228_v16 }
  0xcb   : > { %v236_v24 = vcombine.low %v232_v22, %v233_v23 }
  0xcd   : > { %v238_v25 = vmax.f32 %v210_v7, %v236_v24 }
  0xcf   : > { %242 = vrot.lane.b32.xlu0 %v238_v25, %s664_s3  ;;  %v240_v26 = vcombine.high %v238_v25, %v238_v25 }
  0xd1   : > { %244 = vrot.lane.b32.xlu1 %v240_v26, %s664_s3 }
  0xd3   : > { %254 = vrot.lane.b32.xlu0 %v238_v25, %s665_s21 }
  0xd5   : > { %256 = vrot.lane.b32.xlu1 %v240_v26, %s665_s21 }
 0x141   : > { %v243_v27 = vpop.permute.xlu0 %242 }
 0x143   : > { %v245_v28 = vpop.permute.xlu1 %244 }
 0x144   : > { %v247_v29 = vsel %vm246_vm4, %v243_v27, %v245_v28  ;;  %v248_v30 = vsel %vm246_vm4, %v245_v28, %v243_v27 }
 0x145   : > { %v251_v32 = vcombine.low %v247_v29, %v248_v30  ;;  %v255_v33 = vpop.permute.xlu0 %254 }
 0x147   : > { %v257_v34 = vpop.permute.xlu1 %256  ;;  %v253_v38 = vsel %vm208_vm6, %v251_v32, -inf }
 0x148   : > { %v259_v35 = vsel %vm258_vm5, %v255_v33, %v257_v34  ;;  %v260_v36 = vsel %vm258_vm5, %v257_v34, %v255_v33 }
 0x149   : > { %v263_v37 = vcombine.low %v260_v36, %v259_v35 }
 0x14b   : > { %v265_v39 = vsel %vm209_vm7, %v263_v37, -inf }
 0x14c   : > { %v266_v40 = vmax.f32 %v253_v38, %v265_v39 }
 0x14e   : > { %v267_v41 = vmax.f32 %v238_v25, %v266_v40 }
 0x150   : > { %268 = vst [vmem:[#allocation2] sm:$0xff] %v267_v41  ;;  %269 = vst [vmem:[%s830_s24] sm:$0xff] %v267_v41 }
 0x151 PF: > { %s394_s4 = sshll.u32 %s643_s12, 1  ;;  %s399_s5 = smul.u32 12, %s647_s13 }
 0x152   : > { %s289_s27 = sshll.u32 %s830_s24, 4  ;;  %s271_s26 = scalar_lea.sflag [#allocation6], %s157_s18  ;;  %s839_s27 = int_to_ptr.vmem [resolvable:$true] %s289_s27 }
 0x153   : > { %s285_s22 = sadd.s32 %s399_s5, %s394_s4  ;;  %s537_s3 = scalar_lea.vmem %s839_s27, 128 }
 0x154   : > { %s395_s9 = sshll.u32 %s285_s22, 6  ;;  %p538_p2 = scmp.ne.s32.totalorder %s839_s27, %s537_s3 }
 0x155   : > { %s287_s25 = scalar_lea.hbm %s900_s1, %s395_s9  ;;  %p909_p4 = scmp.ne.s32.totalorder %s904_s28, 0 }
 0x156   : > { %s666_s12 = smov [#allocation7]  }
 0x157   : > { %p539_p11 = pnand %p538_p2, %p909_p4  ;;  %s541_s13 = sshll.u32 %s666_s12, 4  ;;  %s542_s13 = int_to_ptr.vmem [resolvable:$false] %s541_s13 }
 0x158   : > { %s543_s24 = scalar_lea.vmem %s542_s13, 256  ;;  %p544_p8 = scmp.lt.s32.totalorder %s839_s27, %s542_s13 }
 0x159   : > { %p540_p1 = pneg %p539_p11  ;;  %p545_p10 = scmp.lt.s32.totalorder %s543_s24, %s537_s3 }
 0x15b   : > { %p546_p3 = por %p545_p10, %p544_p8 }
 0x15d   : > { %p547_p13 = pnand %p546_p3, %p540_p1 }
 0x15f   : > { %550 = shalt.err (!%p547_p13)
}
 0x160   : > { %s551_s21 = scalar_lea.hbm %s287_s25, 128  ;;  %s555_s5 = scalar_lea.hbm %s900_s1, 1536 }
 0x161   : > { %p552_p0 = scmp.ne.s32.totalorder %s287_s25, %s551_s21  ;;  %p556_p9 = scmp.lt.u32.totalorder %s287_s25, %s900_s1 }
 0x162   : > { %p557_p12 = scmp.lt.u32.totalorder %s555_s5, %s551_s21  ;;  %p559_p2 = scmp.lt.u32.totalorder %s551_s21, %s287_s25 }
 0x163   : > { %p553_p5 = pnand %p552_p0, %p909_p4 }
 0x164   : > { %p558_p7 = por %p557_p12, %p556_p9 }
 0x165   : > { %p554_p6 = pneg %p553_p5 }
 0x166   : > { %p560_p11 = por %p559_p2, %p558_p7 }
 0x168   : > { %p561_p1 = pnand %p560_p11, %p554_p6 }
 0x16a   : > { %564 = shalt.err (!%p561_p1)
}
 0x16b   : > { %402 = dma.vmem_to_hbm [thread:$0]  (%p909_p4), %s839_s27, 128, %s287_s25, %s271_s26  }
 0x16c PF: > { %p413_p8 = scmp.ge.s32.totalorder %s659_s16, 2  ;;  %s301_s17 = sand.u32 1, %s619_s6  }
 0x16d   : > { %p910_p10 = scmp.ne.s32.totalorder %s905_s2, 0  ;;  %s302_s23 = scalar_lea.sflag [#allocation6], %s301_s17 }
 0x16f   : > { %p409_p3 = pnand %p413_p8, %p910_p10 }
 0x171   : > { %614 = dma.done.wait (!%p409_p3), %s302_s23, 128  }
 0x172   : > { %616 = vsyncadd (!%p409_p3), %s302_s23, 4294967168  ;;  %s17_s16 = sadd.s32 1, %s659_s16   ;;  %s911_s6 = smov %s623_s7 }
 0x173   : > { %p14_p13 = scmp.ge.s32.totalorder %s17_s16, 14   ;;  %s912_s7 = smov %s627_s8 }
 0x174   : > { %s913_s8 = smov %s767_s30  ;;  %s914_s9 = smov %s635_s10 }
 0x175   : > { %s915_s10 = smov %s639_s11  ;;  %s916_s11 = smov %s764_s29 }
 0x176   : > { %s917_s12 = smov %s651_s14  ;;  %s918_s13 = smov %s655_s15 }
 0x177   : > { %s919_s14 = smov %s922_s19  ;;  %s920_s15 = smov %s926_s20 }
 0x178   :  { %16 = sbr.rel (!%p14_p13) target bundleno = 9 (0x9), region = 77 }
 0x17f   :  { %307 = vsyncpa [#allocation5], 1 }
 0x180   :  { %309 = vsyncpa [#allocation5 + $0x1], 1 }
 0x181   :  { %310 = vsyncpa [#allocation6], 1 }
 0x182   :  { %312 = vsyncpa [#allocation6 + $0x1], 1 }

</bundles_post_ra>
